<compile_context>
chip_gen: v6e
topology: v6e:2x2x1
jax: 0.10.0
libtpu: 0.0.40
codegen_flags: <defaults>
</compile_context>

<pallas_src>
import functools

import jax
import jax.numpy as jnp
from jax import lax
from jax.experimental import pallas as pl
from jax.experimental.pallas import tpu as pltpu


def _round_up(x, m):
    return (x + m - 1) // m * m


def _dropout_keep_mask(shape, row_offset, seed, p):
    """Stateless Bernoulli(1-p) keep-mask from a uint32 integer hash.

    Depends only on the global (row, col) element index and the seed, so the
    mask is identical regardless of how the token axis is tiled.
    """
    rows = lax.broadcasted_iota(jnp.int32, shape, 0).astype(jnp.uint32)
    cols = lax.broadcasted_iota(jnp.int32, shape, 1).astype(jnp.uint32)
    gid = (rows + row_offset) * jnp.uint32(shape[1]) + cols
    seed_mix = jnp.uint32((int(seed) * 0x9E3779B9) & 0xFFFFFFFF)
    z = gid + seed_mix
    z = z ^ (z >> 16)
    z = z * jnp.uint32(0x7FEB352D)
    z = z ^ (z >> 15)
    z = z * jnp.uint32(0x846CA68B)
    z = z ^ (z >> 16)
    thresh = jnp.uint32(min(int(round(p * 4294967296.0)), 4294967295))
    return z >= thresh          # True -> keep, P(keep) = 1 - p


def _lora_kernel(x_ref, a_ref, b_ref, res_ref, out_ref, *, p, scaling, seed):
    x = x_ref[...]                                   # (tm, H), native dtype
    tm = x_ref.shape[0]

    if p > 0.0:
        row_off = (pl.program_id(0) * tm).astype(jnp.uint32)
        keep = _dropout_keep_mask(x_ref.shape, row_off, seed, p)
        x = jnp.where(keep, x, jnp.zeros_like(x))
        factor = float(scaling) / (1.0 - float(p))   # inverted dropout * LoRA scale
    else:
        factor = float(scaling)

    # (tm, H) @ (H, r) -> (tm, r): MXU in input dtype, f32 accumulation.
    tmp = jnp.dot(x, a_ref[...], preferred_element_type=jnp.float32)
    tmp = tmp * jnp.float32(factor)                  # scale the tiny intermediate
    # (tm, r) @ (r, Hout) -> (tm, Hout), f32 accumulation.
    lora = jnp.dot(tmp.astype(b_ref.dtype), b_ref[...],
                   preferred_element_type=jnp.float32)
    # Accumulate in f32, cast once on the way out.
    out_ref[...] = (res_ref[...].astype(jnp.float32) + lora).astype(out_ref.dtype)


@functools.partial(jax.jit,
                   static_argnames=("dropout_p", "scaling", "seed", "tm"))
def lora_forward(result, data, lora_a, lora_b, *,
                 dropout_p, scaling, seed=0, tm=256):
    """result, data: (B, S, H*); lora_a: (r, H); lora_b: (Hout, r).

    Returns result + ((dropout(data) * scaling) @ lora_a.T) @ lora_b.T.
    """
    B, S, H = data.shape
    Hout = result.shape[-1]
    r = lora_a.shape[0]
    T = B * S

    # Token tile: large (amortize per-grid-step overhead, feed the DMA
    # pipeline), clamped to the 8-aligned token count; pad the remainder.
    tm_eff = min(int(tm), _round_up(T, 8))
    Tp = _round_up(T, tm_eff)

    x2d = data.reshape(T, H)
    res2d = result.reshape(T, Hout)
    if Tp != T:
        x2d = jnp.pad(x2d, ((0, Tp - T), (0, 0)))
        res2d = jnp.pad(res2d, ((0, Tp - T), (0, 0)))

    # One-time pre-transpose: lane-dense adapter layouts, no in-kernel .T.
    a_t = lora_a.T          # (H, r)
    b_t = lora_b.T          # (r, Hout)

    kernel = functools.partial(_lora_kernel, p=float(dropout_p),
                               scaling=float(scaling), seed=int(seed))

    out2d = pl.pallas_call(
        kernel,
        out_shape=jax.ShapeDtypeStruct((Tp, Hout), result.dtype),
        grid_spec=pltpu.PrefetchScalarGridSpec(
            num_scalar_prefetch=0,
            grid=(Tp // tm_eff,),
            in_specs=[
                pl.BlockSpec((tm_eff, H), lambda i: (i, 0)),     # data tile
                pl.BlockSpec((H, r), lambda i: (0, 0)),          # A^T (grid-invariant)
                pl.BlockSpec((r, Hout), lambda i: (0, 0)),       # B^T (grid-invariant)
                pl.BlockSpec((tm_eff, Hout), lambda i: (i, 0)),  # result tile
            ],
            out_specs=pl.BlockSpec((tm_eff, Hout), lambda i: (i, 0)),
        ),
        # In-place accumulate into `result` (matches torch index_add_).
        input_output_aliases={3: 0},
        compiler_params=pltpu.CompilerParams(
            dimension_semantics=("parallel",),
            vmem_limit_bytes=48 * 1024 * 1024,
        ),
    )(x2d, a_t, b_t, res2d)

    return out2d[:T].reshape(B, S, Hout)


def _reference(result, data, lora_a, lora_b, *, dropout_p, scaling, seed):
    """Pure-JAX reference using the exact same hash-based dropout mask."""
    B, S, H = data.shape
    Hout = result.shape[-1]
    T = B * S
    x = data.reshape(T, H).astype(jnp.float32)
    if dropout_p > 0.0:
        keep = _dropout_keep_mask((T, H), jnp.uint32(0), seed, dropout_p)
        x = jnp.where(keep, x, 0.0)
        factor = float(scaling) / (1.0 - float(dropout_p))
    else:
        factor = float(scaling)
    tmp = (x @ lora_a.astype(jnp.float32).T) * factor
    lora = tmp @ lora_b.astype(jnp.float32).T
    out = result.reshape(T, Hout).astype(jnp.float32) + lora
    return out.reshape(B, S, Hout)


if __name__ == "__main__":
    # Small shapes implied by the forward: data (batch, seq, hidden).
    B, S, H, Hout = 2, 8, 32, 32
    r, alpha, dropout_p = 8, 16, 0.1
    scaling = alpha / r
    seed = 42

    key = jax.random.PRNGKey(0)
    k_data, k_res, k_a, k_b = jax.random.split(key, 4)

    data = jax.random.normal(k_data, (B, S, H), dtype=jnp.float32)
    # "result" = output of the frozen base linear layer LoRA adds onto.
    result = jax.random.normal(k_res, (B, S, Hout), dtype=jnp.float32)
    lora_a = jax.random.normal(k_a, (r, H), dtype=jnp.float32) / jnp.sqrt(H)
    lora_b = jax.random.normal(k_b, (Hout, r), dtype=jnp.float32) * 0.01

    out = lora_forward(result, data, lora_a, lora_b,
                       dropout_p=dropout_p, scaling=scaling, seed=seed)
    out = jax.block_until_ready(out)

    assert out.shape == (B, S, Hout) and out.dtype == result.dtype
    assert bool(jnp.all(jnp.isfinite(out))), "non-finite output"

    # TODO(synk): dropout mask is a deterministic in-kernel hash, not torch's
    # global RNG, so it is not bit-identical to F.dropout (algorithm matches).
    ref = _reference(result, data, lora_a, lora_b,
                     dropout_p=dropout_p, scaling=scaling, seed=seed)
    max_err = float(jnp.max(jnp.abs(out.astype(jnp.float32) - ref)))
    assert max_err < 5e-2, f"mismatch vs reference: max|err|={max_err}"

    print("KERNEL_OK")
</pallas_src>

<mosaic_0001>
module attributes {stable_mosaic.version = 11 : i64} {
  func.func @_lora_kernel(%arg0: i32, %arg1: memref<16x32xf32, #tpu.memory_space<vmem>>, %arg2: memref<32x8xf32, #tpu.memory_space<vmem>>, %arg3: memref<8x32xf32, #tpu.memory_space<vmem>>, %arg4: memref<16x32xf32, #tpu.memory_space<vmem>>, %arg5: memref<16x32xf32, #tpu.memory_space<vmem>>) attributes {dimension_semantics = [#tpu.dimension_semantics<parallel>], iteration_bounds = array<i64: 1>, scalar_prefetch = 0 : i64, scratch_operands = 0 : i64, tpu.core_type = #tpu.core_type<tc>, window_params = [{transform_indices = @transform_0, window_bounds = array<i64: 16, 32>}, {pipeline_mode = #tpu.pipeline_mode<synchronous>, transform_indices = @transform_1, window_bounds = array<i64: 32, 8>}, {pipeline_mode = #tpu.pipeline_mode<synchronous>, transform_indices = @transform_2, window_bounds = array<i64: 8, 32>}, {transform_indices = @transform_3, window_bounds = array<i64: 16, 32>}, {transform_indices = @transform_4, window_bounds = array<i64: 16, 32>}]} {
    %c0 = arith.constant 0 : index
    %c0_0 = arith.constant 0 : index
    %0 = vector.load %arg1[%c0, %c0_0] : memref<16x32xf32, #tpu.memory_space<vmem>>, vector<16x32xf32>
    %c16_i32 = arith.constant 16 : i32
    %1 = arith.muli %arg0, %c16_i32 : i32
    %2 = tpu.iota {dimensions = array<i32: 0>} : vector<16x32xi32>
    %3 = tpu.iota {dimensions = array<i32: 1>} : vector<16x32xi32>
    %4 = vector.broadcast %1 : i32 to vector<16x32xi32>
    %5 = arith.addi %2, %4 : vector<16x32xi32>
    %c32_i32 = arith.constant 32 : i32
    %6 = vector.broadcast %c32_i32 : i32 to vector<16x32xi32>
    %7 = arith.muli %5, %6 : vector<16x32xi32>
    %8 = arith.addi %7, %3 : vector<16x32xi32>
    %c-182847398_i32 = arith.constant -182847398 : i32
    %9 = vector.broadcast %c-182847398_i32 : i32 to vector<16x32xi32>
    %10 = arith.addi %8, %9 : vector<16x32xi32>
    %c16_i32_1 = arith.constant 16 : i32
    %11 = vector.broadcast %c16_i32_1 : i32 to vector<16x32xi32>
    %12 = arith.shrui %10, %11 : vector<16x32xi32>
    %13 = arith.xori %10, %12 : vector<16x32xi32>
    %c2146121005_i32 = arith.constant 2146121005 : i32
    %14 = vector.broadcast %c2146121005_i32 : i32 to vector<16x32xi32>
    %15 = arith.muli %13, %14 : vector<16x32xi32>
    %c15_i32 = arith.constant 15 : i32
    %16 = vector.broadcast %c15_i32 : i32 to vector<16x32xi32>
    %17 = arith.shrui %15, %16 : vector<16x32xi32>
    %18 = arith.xori %15, %17 : vector<16x32xi32>
    %c-2073254261_i32 = arith.constant -2073254261 : i32
    %19 = vector.broadcast %c-2073254261_i32 : i32 to vector<16x32xi32>
    %20 = arith.muli %18, %19 : vector<16x32xi32>
    %c16_i32_2 = arith.constant 16 : i32
    %21 = vector.broadcast %c16_i32_2 : i32 to vector<16x32xi32>
    %22 = arith.shrui %20, %21 : vector<16x32xi32>
    %23 = arith.xori %20, %22 : vector<16x32xi32>
    %c429496730_i32 = arith.constant 429496730 : i32
    %24 = vector.broadcast %c429496730_i32 : i32 to vector<16x32xi32>
    %25 = arith.cmpi uge, %23, %24 : vector<16x32xi32>
    %cst = arith.constant 0.000000e+00 : f32
    %26 = vector.broadcast %cst : f32 to vector<16x32xf32>
    %27 = arith.select %25, %0, %26 : vector<16x32xi1>, vector<16x32xf32>
    %c0_3 = arith.constant 0 : index
    %c0_4 = arith.constant 0 : index
    %28 = vector.load %arg2[%c0_3, %c0_4] : memref<32x8xf32, #tpu.memory_space<vmem>>, vector<32x8xf32>
    %cst_5 = arith.constant dense<0.000000e+00> : vector<16x8xf32>
    %29 = tpu.matmul %27, %28, %cst_5 {dimension_numbers = #tpu.dot_dimension_numbers<[1], [0], [0], [1], [0, 0, 1, 1], [], []>} : vector<16x32xf32>, vector<32x8xf32>, vector<16x8xf32> -> vector<16x8xf32>
    %cst_6 = arith.constant 2.22222233 : f32
    %30 = vector.broadcast %cst_6 : f32 to vector<16x8xf32>
    %31 = arith.mulf %29, %30 : vector<16x8xf32>
    %c0_7 = arith.constant 0 : index
    %c0_8 = arith.constant 0 : index
    %32 = vector.load %arg3[%c0_7, %c0_8] : memref<8x32xf32, #tpu.memory_space<vmem>>, vector<8x32xf32>
    %cst_9 = arith.constant dense<0.000000e+00> : vector<16x32xf32>
    %33 = tpu.matmul %31, %32, %cst_9 {dimension_numbers = #tpu.dot_dimension_numbers<[1], [0], [0], [1], [0, 0, 1, 1], [], []>} : vector<16x8xf32>, vector<8x32xf32>, vector<16x32xf32> -> vector<16x32xf32>
    %c0_10 = arith.constant 0 : index
    %c0_11 = arith.constant 0 : index
    %34 = vector.load %arg4[%c0_10, %c0_11] : memref<16x32xf32, #tpu.memory_space<vmem>>, vector<16x32xf32>
    %35 = arith.addf %34, %33 : vector<16x32xf32>
    %c0_12 = arith.constant 0 : index
    %c0_13 = arith.constant 0 : index
    %36 = vector.load %arg5[%c0_12, %c0_13] : memref<16x32xf32, #tpu.memory_space<vmem>>, vector<16x32xf32>
    tpu.vector_store %arg5[%c0_12, %c0_13], %35 {strides = array<i32>} : memref<16x32xf32, #tpu.memory_space<vmem>>, vector<16x32xf32>,
    return
  }
  func.func @transform_0(%arg0: i32) -> (i32, i32) {
    %c0_i32 = arith.constant 0 : i32
    %c0_i32_0 = arith.constant 0 : i32
    return %arg0, %c0_i32 : i32, i32
  }
  func.func @transform_1(%arg0: i32) -> (i32, i32) {
    %c0_i32 = arith.constant 0 : i32
    %c0_i32_0 = arith.constant 0 : i32
    %c0_i32_1 = arith.constant 0 : i32
    return %c0_i32, %c0_i32_0 : i32, i32
  }
  func.func @transform_2(%arg0: i32) -> (i32, i32) {
    %c0_i32 = arith.constant 0 : i32
    %c0_i32_0 = arith.constant 0 : i32
    %c0_i32_1 = arith.constant 0 : i32
    return %c0_i32, %c0_i32_0 : i32, i32
  }
  func.func @transform_3(%arg0: i32) -> (i32, i32) {
    %c0_i32 = arith.constant 0 : i32
    %c0_i32_0 = arith.constant 0 : i32
    return %arg0, %c0_i32 : i32, i32
  }
  func.func @transform_4(%arg0: i32) -> (i32, i32) {
    %c0_i32 = arith.constant 0 : i32
    %c0_i32_0 = arith.constant 0 : i32
    return %arg0, %c0_i32 : i32, i32
  }
}

</mosaic_0001>

<bundles_post_ra>
// kernel: lora_forward.1
= control target key start
LH: loop header
LB: loop body
LE: loop exit
PB: predicated region body
PF: predicated region fallthrough
CT: control target
= control target key end

     0   :  { %v20_v0 = vlaneseq  ;;  %vm58_vm0 = vcmask 261120   ;;  %vm143_vm3 = vcmask 64512   ;;  %s326_s1 = inlined_call_operand.vmem [shape: f32[32,8], index: 1, kind: input, shape index: {}]   ;;  %s327_s0 = inlined_call_operand.vmem [shape: f32[16,32], index: 0, kind: input, shape index: {}]   ;;  %s328_s2 = inlined_call_operand.vmem [shape: f32[8,32], index: 2, kind: input, shape index: {}]   ;;  %s329_s3 = inlined_call_operand.vmem [shape: f32[16,32], index: 3, kind: input, shape index: {}, may-alias: {3,4}]   ;;  %s330_s4 = inlined_call_operand.vmem [shape: f32[16,32], index: 4, kind: output, shape index: {}, may-alias: {3,4}]  }
   0x1   :  { %v57_v1 = vld [vmem:[%s326_s1 + $0x18] sm:$0xff]  ;;  %v56_v2 = vld [vmem:[%s326_s1 + $0x10] sm:$0xff]  ;;  %v55_v5 = vld [vmem:[%s326_s1 + $0x8] sm:$0xff] }
   0x2   :  { %248 = vmatprep.subr.mxu0 %v57_v1  ;;  %v21_v3 = vshrl.u32 %v20_v0, 7  ;;  %v24_v4 = vand.u32 127, %v20_v0  ;;  %v54_v8 = vld [vmem:[%s326_s1] sm:$0xff]  ;;  %v18_v30 = vld [vmem:[%s327_s0 + $0x8] sm:$0xff] }
   0x3   :  { %249 = vmatpush3.msra.mxu0 %v57_v1  ;;  %v17_v27 = vld [vmem:[%s327_s0] sm:$0xff]  ;;  %v226_v39 = vld [vmem:[%s329_s3 + $0x8] sm:$0xff] }
   0x4   :  { %250 = vmatprep.subr.mxu0 %v56_v2  ;;  %v28_v6 = vmul.u32 32, %v21_v3  ;;  %v22_v7 = vadd.s32 8, %v21_v3  ;;  %v142_v34 = vld [vmem:[%s328_s2] sm:$0xff] }
   0x5   :  { %251 = vmatpush3.msra.mxu0 %v56_v2  ;;  %259 = vmatprep.subr.mxu1 %v142_v34  ;;  %v225_v41 = vld [vmem:[%s329_s3] sm:$0xff] }
   0x6   :  { %252 = vmatprep.subr.mxu0 %v55_v5  ;;  %v30_v9 = vadd.s32 %v28_v6, %v24_v4  ;;  %v29_v10 = vmul.u32 32, %v22_v7  ;;  %260 = vmatpush3.msra.mxu1 %v142_v34 }
   0x7   :  { %253 = vmatpush3.msra.mxu0 %v55_v5 }
   0x8   :  { %254 = vmatprep.subr.mxu0 %v54_v8  ;;  %v32_v11 = vadd.s32 4112119898, %v30_v9  ;;  %v31_v12 = vadd.s32 %v29_v10, %v24_v4 }
   0x9   :  { %255 = vmatpush3.msra.mxu0 %v54_v8 }
   0xa   :  { %v34_v13 = vshrl.u32 %v32_v11, 16  ;;  %v33_v14 = vadd.s32 4112119898, %v31_v12 }
   0xc   :  { %v36_v15 = vxor.u32 %v34_v13, %v32_v11  ;;  %v35_v16 = vshrl.u32 %v33_v14, 16 }
   0xe   :  { %v38_v17 = vmul.u32 2146121005, %v36_v15  ;;  %v37_v18 = vxor.u32 %v35_v16, %v33_v14 }
  0x10   :  { %v40_v19 = vshrl.u32 %v38_v17, 15  ;;  %v39_v20 = vmul.u32 2146121005, %v37_v18 }
  0x12   :  { %v42_v21 = vxor.u32 %v40_v19, %v38_v17  ;;  %v41_v22 = vshrl.u32 %v39_v20, 15 }
  0x14   :  { %v44_v23 = vmul.u32 2221713035, %v42_v21  ;;  %v43_v24 = vxor.u32 %v41_v22, %v39_v20 }
  0x16   :  { %v46_v25 = vshrl.u32 %v44_v23, 16  ;;  %v45_v26 = vmul.u32 2221713035, %v43_v24 }
  0x18   :  { %v48_v28 = vxor.u32 %v46_v25, %v44_v23  ;;  %v47_v29 = vshrl.u32 %v45_v26, 16 }
  0x1a   :  { %vm50_vm1 = vcmp.ge.u32.totalorder %v48_v28, 429496730  ;;  %v49_v31 = vxor.u32 %v47_v29, %v45_v26 }
  0x1b   :  { %v52_v32 = vsel %vm50_vm1, %v17_v27, 0.0 }
  0x1c   :  { %256 = vmatprep.mubr.msk.f32.mxu0 %vm58_vm0, %v52_v32  ;;  %vm51_vm2 = vcmp.ge.u32.totalorder %v49_v31, 429496730 }
  0x1d   :  { %v53_v33 = vsel %vm51_vm2, %v18_v30, 0.0 }
  0x1e   :  { %257 = vmatmul.mubr.msk.f32.vlgmr.msra.gmra.mxu0 %vm58_vm0, %v53_v33 }
  0xde   :  { %v258_v35 = vpop.f32.mrf.mxu0 }
  0xdf   :  { %v141_v38 = vmul.f32 2.2222223, %v258_v35 }
  0xe0   :  { %v131_v36 = vpop.f32.mrf.mxu0 }
  0xe1   :  { %v140_v37 = vmul.f32 2.2222223, %v131_v36 }
  0xe3   :  { %261 = vmatprep.mubr.msk.f32.mxu1 %vm143_vm3, %v140_v37 }
  0xe4   :  { %262 = vmatmul.mubr.msk.f32.vlgmr.msra.gmra.mxu1 %vm143_vm3, %v141_v38 }
 0x1a4   :  { %v263_v40 = vpop.f32.mrf.mxu1 }
 0x1a5   :  { %v228_v42 = vadd.f32 %v263_v40, %v226_v39 }
 0x1a6   :  { %v216_v43 = vpop.f32.mrf.mxu1 }
 0x1a7   :  { %230 = vst.msk [vmem:[%s330_s4 + $0x8] sm:$0xff] %vm58_vm0, %v228_v42  ;;  %v227_v44 = vadd.f32 %v225_v41, %v216_v43 }
 0x1a9   :  { %229 = vst.msk [vmem:[%s330_s4] sm:$0xff] %vm58_vm0, %v227_v44 }

</bundles_post_ra>
